<compile_context>
chip_gen: v6e
topology: v6e:2x2x1
jax: 0.10.0
libtpu: 0.0.40
codegen_flags: <defaults>
</compile_context>

<pallas_src>
import math

import numpy as np
import jax
import jax.numpy as jnp
from jax.experimental import pallas as pl
from jax.experimental.pallas import tpu as pltpu


# ----------------------------------------------------------------------------
# Path A (default): direct HBM -> HBM DMA copy, no VMEM staging.
# ----------------------------------------------------------------------------

_MIN_DMA_CHUNK_BYTES = 1 << 20  # don't split the copy below ~1 MiB per chunk


def _make_hbm_copy_kernel(n_chunks):
    def kernel(x_hbm, o_hbm, sems):
        copies = []
        for i in range(n_chunks):  # static Python loop -> static descriptors
            src = x_hbm.at[i] if n_chunks > 1 else x_hbm
            dst = o_hbm.at[i] if n_chunks > 1 else o_hbm
            cp = pltpu.make_async_copy(src, dst, sems.at[i])
            cp.start()
            copies.append(cp)
        for cp in copies:
            cp.wait()
    return kernel


def _dma_layout(x):
    """Choose (n_chunks, 3-D chunked shape) for the HBM->HBM copy."""
    total = int(x.size)
    itemsize = x.dtype.itemsize
    if total % 128 != 0:
        return 1, None  # single whole-array DMA in the original shape
    rows = total // 128
    n = 1
    for c in (8, 4, 2):  # a few concurrent DMAs to spread over DMA engines
        if rows % c == 0 and (total * itemsize) // c >= _MIN_DMA_CHUNK_BYTES:
            n = c
            break
    return n, (n, rows // n, 128)


def _pallas_identity_dma(x):
    n_chunks, shape3 = _dma_layout(x)
    x_in = x if shape3 is None else x.reshape(shape3)
    y = pl.pallas_call(
        _make_hbm_copy_kernel(n_chunks),
        out_shape=jax.ShapeDtypeStruct(x_in.shape, x_in.dtype),
        in_specs=[pl.BlockSpec(memory_space=pl.ANY)],
        out_specs=pl.BlockSpec(memory_space=pl.ANY),
        scratch_shapes=[pltpu.SemaphoreType.DMA((n_chunks,))],
    )(x_in)
    return y if shape3 is None else y.reshape(x.shape)


# ----------------------------------------------------------------------------
# Path B: BlockSpec-pipelined VMEM copy (contiguous full-width blocks).
# ----------------------------------------------------------------------------

def _identity_block_kernel(x_ref, o_ref):
    o_ref[...] = x_ref[...]


def _vmem_budget():
    """(per-block byte budget, vmem_limit_bytes) derived from chip VMEM size."""
    try:
        cap = int(pltpu.get_tpu_info().vmem_capacity_bytes)
    except Exception:
        cap = 64 * 1024 * 1024  # conservative default (fits every generation)
    vmem_limit = min(cap // 2, 64 * 1024 * 1024)   # 64 MiB v5e/v6e, 32 MiB v7x
    # Resident ~= 2 buffers x (in + out) x block = 4x block; keep headroom.
    block_budget = max(1 << 20, min(cap // 10, vmem_limit // 5))
    return block_budget, vmem_limit


def _sublane_pack(itemsize):
    # Sub-32-bit dtypes pack along sublanes: 8 rows f32, 16 bf16, 32 int8/fp8.
    return 8 * max(1, 4 // max(1, itemsize))


def _lane_dense_2d_shape(total):
    """(rows, cols) with cols a multiple of 128, or None if impossible."""
    if total % 128 == 0:
        for cand in (8192, 4096, 2048, 1024, 512, 256, 128):
            if total % cand == 0:
                return total // cand, cand
    return None


def _pallas_identity_2d(x2d, block_budget, vmem_limit):
    rows, cols = x2d.shape
    itemsize = x2d.dtype.itemsize
    sub = _sublane_pack(itemsize)

    # Full-width blocks whenever one sublane-group stripe fits the budget ->
    # every block is one contiguous HBM slab (single-run DMAs, no striding).
    if cols * sub * itemsize <= block_budget:
        tile_c = cols
    else:  # pathological width; fall back to the widest 128-multiple that fits
        tile_c = min(cols, max(128, ((block_budget // (sub * itemsize)) // 128) * 128))

    max_r = max(1, block_budget // max(1, tile_c * itemsize))
    tile_r = rows if max_r >= rows else max(sub, (max_r // sub) * sub)

    # v7x megacore: if a large array collapsed to a single block, split the
    # leading "parallel" axis so both TensorCores get work (extra grid step is
    # ~0.35 us, irrelevant at >= 1 MiB).
    if (pl.cdiv(rows, tile_r) == 1 and rows >= 2 * sub
            and rows * cols * itemsize >= (1 << 20)):
        tile_r = (((rows + 1) // 2) + sub - 1) // sub * sub

    grid = (pl.cdiv(rows, tile_r), pl.cdiv(cols, tile_c))
    return pl.pallas_call(
        _identity_block_kernel,
        out_shape=jax.ShapeDtypeStruct((rows, cols), x2d.dtype),
        grid_spec=pltpu.PrefetchScalarGridSpec(
            num_scalar_prefetch=0,
            grid=grid,
            in_specs=[pl.BlockSpec((tile_r, tile_c), lambda i, j: (i, j))],
            out_specs=pl.BlockSpec((tile_r, tile_c), lambda i, j: (i, j)),
        ),
        compiler_params=pltpu.CompilerParams(
            dimension_semantics=("parallel", "parallel"),
            vmem_limit_bytes=vmem_limit,
        ),
    )(x2d)


def _pallas_identity_vmem(x):
    shape = x.shape
    total = int(math.prod(shape)) if shape else 1
    block_budget, vmem_limit = _vmem_budget()
    rc = _lane_dense_2d_shape(total)
    if rc is None:
        # Pad to whole (sublane-pack, 128) tiles so every store stays unmasked
        # and lane-dense, then slice the tail off afterwards.
        sub = _sublane_pack(x.dtype.itemsize)
        unit = sub * 128
        padded = ((total + unit - 1) // unit) * unit
        flat = jnp.pad(x.reshape(total), (0, padded - total))
        y2d = _pallas_identity_2d(flat.reshape(padded // 128, 128),
                                  block_budget, vmem_limit)
        return y2d.reshape(padded)[:total].reshape(shape)
    rows, cols = rc
    y2d = _pallas_identity_2d(x.reshape(rows, cols), block_budget, vmem_limit)
    return y2d.reshape(shape)


def _pallas_identity(x, mode):
    if mode == "dma":
        try:
            return jax.block_until_ready(_pallas_identity_dma(x))
        except Exception:
            # TODO(synk): if this toolchain rejects direct HBM->HBM local DMA,
            # gracefully fall back to the VMEM-pipelined contiguous copy.
            return _pallas_identity_vmem(x)
    return _pallas_identity_vmem(x)


# ----------------------------------------------------------------------------
# Backbone (matches the PyTorch base class semantics).
# ----------------------------------------------------------------------------

class Backbone:
    """JAX/Pallas port of the PyTorch `Backbone` base class.

    `layers` is an empty list (matching the reference empty nn.ModuleList), so
    forward is the identity.  `identity_mode` selects how the identity is
    realized:
      * "none" : return x directly (the true optimum: zero HBM traffic),
      * "dma"  : single grid-less Pallas kernel issuing HBM->HBM DMA chunks,
      * "vmem" : BlockSpec-pipelined VMEM copy with contiguous full-width blocks.
    """

    def __init__(self, identity_mode="dma"):
        self.layers = []                 # no layers in the base module
        self._intermediate_outputs = []
        self.identity_mode = identity_mode

    @property
    def intermediate_outputs(self):
        return self._intermediate_outputs

    def _record_intermediate(self, x):
        # Equivalent of IntermediateOutputsContainer.forward for subclasses.
        # TODO(synk): Python-list bookkeeping is host-side state, not jit-safe.
        self._intermediate_outputs.append(x)
        return x

    def __call__(self, x):
        # intermediate_outputs_container.flush()
        self._intermediate_outputs = []
        # for layer in self.layers: x = layer(x)   (empty list -> identity)
        for layer in self.layers:
            x = layer(x)
        if self.layers or self.identity_mode == "none":
            return x
        return _pallas_identity(x, self.identity_mode)


if __name__ == "__main__":
    key = jax.random.PRNGKey(0)
    key, k_odd = jax.random.split(key)
    # Small NCHW input consistent with a conv backbone's expected input.
    x = jax.random.normal(key, (2, 4, 16, 16), dtype=jnp.float32)
    x_host = np.asarray(x)  # host reference copy

    # 1) Default path: direct HBM->HBM DMA identity (no VMEM staging).
    bb_dma = Backbone(identity_mode="dma")
    y = jax.block_until_ready(bb_dma(x))
    assert y.shape == x.shape and y.dtype == x.dtype
    assert np.array_equal(np.asarray(y), x_host)
    assert bb_dma.intermediate_outputs == []  # flushed, no container layers

    # 2) VMEM-pipelined path with contiguous full-width blocks.
    bb_vmem = Backbone(identity_mode="vmem")
    y2 = jax.block_until_ready(bb_vmem(x))
    assert np.array_equal(np.asarray(y2), x_host)
    assert bb_vmem.intermediate_outputs == []

    # 2b) bf16 input: exercises dtype-aware sublane-pack tile alignment.
    xb = x.astype(jnp.bfloat16)
    yb = jax.block_until_ready(bb_vmem(xb))
    assert np.array_equal(np.asarray(yb, dtype=np.float32),
                          np.asarray(xb, dtype=np.float32))

    # 2c) element count not a multiple of 128: exercises pad-and-slice fallback.
    xo = jax.random.normal(k_odd, (3, 5, 7), dtype=jnp.float32)
    yo = jax.block_until_ready(bb_vmem(xo))
    assert np.array_equal(np.asarray(yo), np.asarray(xo))

    # 3) True optimum for the no-layer backbone: zero-copy return of x.
    bb_none = Backbone(identity_mode="none")
    y3 = jax.block_until_ready(bb_none(x))
    assert np.array_equal(np.asarray(y3), x_host)
    assert bb_none.intermediate_outputs == []

    print("KERNEL_OK")
</pallas_src>

<mosaic_0001>
module attributes {stable_mosaic.version = 11 : i64} {
  func.func @kernel(%arg0: memref<1x16x128xf32, #tpu.memory_space<any>>, %arg1: memref<1x16x128xf32, #tpu.memory_space<any>>, %arg2: memref<1x!tpu.dma_semaphore, #tpu.memory_space<semaphore_mem>>) attributes {dimension_semantics = [], scalar_prefetch = 0 : i64, scratch_operands = 1 : i64, tpu.core_type = #tpu.core_type<tc>} {
    %c0_i32 = arith.constant 0 : i32
    %0 = tpu.memref_slice %arg2[%c0_i32] : memref<1x!tpu.dma_semaphore, #tpu.memory_space<semaphore_mem>> -> memref<1x!tpu.dma_semaphore, #tpu.memory_space<semaphore_mem>>
    %1 = tpu.memref_squeeze %0 : memref<1x!tpu.dma_semaphore, #tpu.memory_space<semaphore_mem>> -> memref<!tpu.dma_semaphore, #tpu.memory_space<semaphore_mem>>
    tpu.enqueue_dma source(%arg0 : memref<1x16x128xf32, #tpu.memory_space<any>>) target(%arg1 : memref<1x16x128xf32, #tpu.memory_space<any>>) target_semaphore(%1 : memref<!tpu.dma_semaphore, #tpu.memory_space<semaphore_mem>>)
    %c0_i32_0 = arith.constant 0 : i32
    %2 = tpu.memref_slice %arg2[%c0_i32_0] : memref<1x!tpu.dma_semaphore, #tpu.memory_space<semaphore_mem>> -> memref<1x!tpu.dma_semaphore, #tpu.memory_space<semaphore_mem>>
    %3 = tpu.memref_squeeze %2 : memref<1x!tpu.dma_semaphore, #tpu.memory_space<semaphore_mem>> -> memref<!tpu.dma_semaphore, #tpu.memory_space<semaphore_mem>>
    tpu.wait_dma2 semaphore(%3 : memref<!tpu.dma_semaphore, #tpu.memory_space<semaphore_mem>>) src(%arg0 : memref<1x16x128xf32, #tpu.memory_space<any>>) dst(%arg1 : memref<1x16x128xf32, #tpu.memory_space<any>>)
    return
  }
}

module attributes {stable_mosaic.version = 11 : i64} {
  func.func @_identity_block_kernel(%arg0: i32, %arg1: i32, %arg2: memref<1x2048xf32, #tpu.memory_space<vmem>>, %arg3: memref<1x2048xf32, #tpu.memory_space<vmem>>) attributes {dimension_semantics = [#tpu.dimension_semantics<parallel>, #tpu.dimension_semantics<parallel>], iteration_bounds = array<i64: 1, 1>, scalar_prefetch = 0 : i64, scratch_operands = 0 : i64, tpu.core_type = #tpu.core_type<tc>, window_params = [{transform_indices = @transform_0, window_bounds = array<i64: 1, 2048>}, {transform_indices = @transform_1, window_bounds = array<i64: 1, 2048>}]} {
    %c0 = arith.constant 0 : index
    %c0_0 = arith.constant 0 : index
    %0 = vector.load %arg2[%c0, %c0_0] : memref<1x2048xf32, #tpu.memory_space<vmem>>, vector<1x2048xf32>
    %c0_1 = arith.constant 0 : index
    %c0_2 = arith.constant 0 : index
    %1 = vector.load %arg3[%c0_1, %c0_2] : memref<1x2048xf32, #tpu.memory_space<vmem>>, vector<1x2048xf32>
    tpu.vector_store %arg3[%c0_1, %c0_2], %0 {strides = array<i32>} : memref<1x2048xf32, #tpu.memory_space<vmem>>, vector<1x2048xf32>,
    return
  }
  func.func @transform_0(%arg0: i32, %arg1: i32) -> (i32, i32) {
    %c0_i32 = arith.constant 0 : i32
    return %arg0, %arg1 : i32, i32
  }
  func.func @transform_1(%arg0: i32, %arg1: i32) -> (i32, i32) {
    %c0_i32 = arith.constant 0 : i32
    return %arg0, %arg1 : i32, i32
  }
}

</mosaic_0001>

<bundles_post_ra>
// kernel: tpu_custom_call.1
= control target key start
LH: loop header
LB: loop body
LE: loop exit
PB: predicated region body
PF: predicated region fallthrough
CT: control target
= control target key end

     0   :  { %s29_s6 = smov [#allocation2]   ;;  %s30_s7 = smov 131072   ;;  %s48_s0 = inlined_call_operand.hbm [shape: f32[1,16,128], index: 0, kind: input, shape index: {}]   ;;  %s49_s1 = inlined_call_operand.hbm [shape: f32[1,16,128], index: 1, kind: output, shape index: {}]  }
   0x1   :  { %s31_s8 = smov 0  }
   0x2   :  { %12 = dma.general %s48_s0, 256, %s49_s1, %s29_s6, %s30_s7, [#allocation4], %s31_s8, 0  }
   0x3   :  { %27 = dma.done.wait [#allocation2], 256 }
   0x4   :  { %28 = vsyncadd [#allocation2], 4294967040 }
   0x5   :  { %17 = vsyncmov [#allocation2] }
   0x8   :  { %s18_s13 = vpop.sfrf %17 }
   0x9   :  { %p23_p0 = scmp.ne.s32.totalorder %s18_s13, 0 }
   0xb   :  { %22 = shalt.err (%p23_p0)  }

// kernel: tpu_custom_call.1
= control target key start
LH: loop header
LB: loop body
LE: loop exit
PB: predicated region body
PF: predicated region fallthrough
CT: control target
= control target key end

     0   :  { %6 = vsyncpa [#allocation3], 0  ;;  %s104_s0 = inlined_call_operand.hbm [shape: f32[1,2048], index: 0, kind: input, shape index: {}]   ;;  %s105_s1 = inlined_call_operand.hbm [shape: f32[1,2048], index: 1, kind: output, shape index: {}]  }
   0x1   :  { %7 = vsyncpa [#allocation4], 0  ;;  %s86_s6 = smov [#allocation2]  }
   0x2   :  { %s14_s7 = sshll.u32 %s86_s6, 4  ;;  %s15_s7 = int_to_ptr.vmem [resolvable:$true] %s14_s7 }
   0x3   :  { %s50_s8 = scalar_lea.vmem %s15_s7, 256  ;;  %p55_p1 = scmp.lt.s32.totalorder %s15_s7, %s15_s7 }
   0x4   :  { %p51_p0 = scmp.ne.s32.totalorder %s15_s7, %s50_s8  ;;  %p56_p2 = scmp.lt.s32.totalorder %s50_s8, %s50_s8 }
   0x6   :  { %p57_p3 = por %p56_p2, %p55_p1 }
   0x8   :  { %p58_p4 = pnand %p57_p3, %p51_p0 }
   0xa   :  { %61 = shalt.err (!%p58_p4)
}
   0xb   :  { %17 = dma.hbm_to_vmem [thread:$0]  %s104_s0, 256, %s15_s7, [#allocation3]  }
   0xc   :  { %82 = dma.done.wait [#allocation3], 256  }
   0xd   :  { %83 = vsyncadd [#allocation3], 4294967040  ;;  %s87_s11 = smov [#allocation5]   ;;  %v21_v0 = vld [vmem:[#allocation2] sm:$0xff]  ;;  %v22_v1 = vld [vmem:[#allocation2 + $0x8] sm:$0xff] }
   0xe   :  { %s31_s12 = sshll.u32 %s87_s11, 4  ;;  %23 = vst [vmem:[#allocation5] sm:$0xff] %v21_v0  ;;  %24 = vst [vmem:[#allocation5 + $0x8] sm:$0xff] %v22_v1  ;;  %s32_s12 = int_to_ptr.vmem [resolvable:$true] %s31_s12 }
   0xf   :  { %s62_s13 = scalar_lea.vmem %s32_s12, 256  ;;  %p67_p6 = scmp.lt.s32.totalorder %s32_s12, %s32_s12 }
  0x10   :  { %p63_p5 = scmp.ne.s32.totalorder %s32_s12, %s62_s13  ;;  %p68_p7 = scmp.lt.s32.totalorder %s62_s13, %s62_s13 }
  0x12   :  { %p69_p8 = por %p68_p7, %p67_p6 }
  0x14   :  { %p70_p9 = pnand %p69_p8, %p63_p5 }
  0x16   :  { %73 = shalt.err (!%p70_p9)
}
  0x17   :  { %34 = dma.vmem_to_hbm [thread:$0]  %s32_s12, 256, %s105_s1, [#allocation4]  }
  0x18   :  { %84 = dma.done.wait [#allocation4], 256  }
  0x19   :  { %85 = vsyncadd [#allocation4], 4294967040 }
  0x1a   :  { %38 = vsyncpa [#allocation3], 1 }
  0x1b   :  { %39 = vsyncpa [#allocation4], 1 }

</bundles_post_ra>
